<compile_context>
chip_gen: v5e
topology: v5e:2x2
jax: 0.10.0
libtpu: 0.0.40
codegen_flags: <defaults>
</compile_context>

<pallas_src>
import jax
import jax.numpy as jnp
import numpy as np
from jax import lax
from jax.experimental import pallas as pl
from jax.experimental.pallas import tpu as pltpu

_NEG_BIG = -1e30  # finite "minus infinity" (avoids inf-inf / 0*inf hazards)


def _round_up(a, b):
    return ((a + b - 1) // b) * b


def _attn_pool_kernel(x_ref, brow_ref, w1_ref, b1_ref, w2v_ref, b2v_ref, w2g_ref,
                      out_ref, m_ref, den_ref, acc_ref):
    """One node-tile step of the online segment-softmax attention pooling.

    x_ref    : [TN, E]        node features (original dtype; cast in-kernel)
    brow_ref : [1, TN]        graph id per node, lane-major (padding nodes = -1)
    w1_ref   : [E, H2p]       fused layer-1 weight  [w1_gate | w1_value | 0], bf16
    b1_ref   : [1, H2p]       fused layer-1 bias, f32
    w2v_ref  : [H2p, Dp]      value-head layer-2 weight (zero rows for gate hidden), bf16
    b2v_ref  : [1, Dp]        value-head layer-2 bias, f32
    w2g_ref  : [Gp, H2p]      gate-head weight replicated per graph row, bf16
    out_ref  : [Gp, Dp]       pooled output slab (written on the last step)
    m_ref    : [Gp, 1]        running per-graph max            (VMEM scratch, f32)
    den_ref  : [Gp, 1]        running softmax denominator      (VMEM scratch, f32)
    acc_ref  : [Gp, Dp]       running unnormalized accumulator (VMEM scratch, f32)
    """
    step = pl.program_id(0)

    @pl.when(step == 0)
    def _init():
        m_ref[...] = jnp.full(m_ref.shape, _NEG_BIG, m_ref.dtype)
        den_ref[...] = jnp.zeros_like(den_ref)
        acc_ref[...] = jnp.zeros_like(acc_ref)

    # ---- fused MLPs: bf16 operands, f32 accumulation -------------------------
    xb = x_ref[...].astype(w1_ref.dtype)                               # [TN, E] bf16
    h = jnp.dot(xb, w1_ref[...], preferred_element_type=jnp.float32) + b1_ref[...]
    h = jnp.maximum(h, 0.0)                                            # [TN, H2p] f32 (lane-dense)
    hb = h.astype(w2v_ref.dtype)                                       # bf16

    # value head: [TN, Dp]
    vals = jnp.dot(hb, w2v_ref[...], preferred_element_type=jnp.float32) + b2v_ref[...]

    # gate logits, replicated across graph rows -> graph-major [Gp, TN].
    # A @ B^T contraction (lhs dim 1 with rhs dim 1), no transpose op needed.
    # The gate bias is a per-node constant and cancels in the softmax.
    gate = lax.dot_general(w2g_ref[...], hb, (((1,), (1,)), ((), ())),
                           preferred_element_type=jnp.float32)         # [Gp, TN] f32

    # ---- membership mask (padding nodes have batch id -1 -> no row matches) --
    bids = brow_ref[...]                                               # [1, TN] i32
    g_iota = lax.broadcasted_iota(jnp.int32, gate.shape, 0)            # [Gp, TN]
    member = bids == g_iota                                            # [Gp, TN] bool

    # ---- online segment softmax (all bookkeeping in [Gp, 1] column form) -----
    masked_gate = jnp.where(member, gate, _NEG_BIG)                    # [Gp, TN]
    tile_max = jnp.max(masked_gate, axis=1, keepdims=True)             # [Gp, 1]
    m_old = m_ref[...]
    m_new = jnp.maximum(m_old, tile_max)
    m_ref[...] = m_new
    scale = jnp.exp(m_old - m_new)                                     # [Gp, 1], <= 1

    # clamp to <= 0 so exp never overflows (members always satisfy gate <= m_new);
    # non-member / padding entries are forced to exactly 0 -> no 0*inf NaN.
    shifted = jnp.minimum(masked_gate - m_new, 0.0)
    alpha = jnp.where(member, jnp.exp(shifted), 0.0)                   # [Gp, TN] f32

    # denominator: exact f32 lane-reduce on the (idle) XLU.
    den_ref[...] = scale * den_ref[...] + jnp.sum(alpha, axis=1, keepdims=True)

    # scatter-add: bf16 operands, f32 accumulation (single-pass MXU on v5e).
    contrib = jnp.dot(alpha.astype(w2v_ref.dtype), vals.astype(w2v_ref.dtype),
                      preferred_element_type=jnp.float32)              # [Gp, Dp]
    acc_ref[...] = scale * acc_ref[...] + contrib

    @pl.when(step == pl.num_programs(0) - 1)
    def _finalize():
        denom = jnp.maximum(den_ref[...], 1e-30)                       # guard empty graphs
        out_ref[...] = acc_ref[...] / denom                            # exact divide


def gnn_attn_drug_pooling(x, batch, params, num_graphs, *,
                          block_n=1024, matmul_dtype=jnp.bfloat16):
    """x: [N, E] node features, batch: [N] int graph ids in [0, num_graphs)."""
    N, E = x.shape
    H = params["w1"].shape[1]
    D = params["w2"].shape[1]
    G = int(num_graphs)
    assert block_n % 128 == 0

    H2 = 2 * H
    H2p = _round_up(H2, 128)           # lane-dense fused hidden width
    Dp = _round_up(D, 128)             # lane-dense output width
    Gp = _round_up(max(G, 8), 8)       # sublane-aligned graph count

    # node tiling: single large tile when N fits, else block_n (multiple of 128
    # so the [1, tile_n] batch block stays lane-aligned).
    if N <= block_n:
        tile_n = _round_up(N, 8)
    else:
        tile_n = block_n
    N_pad = _round_up(N, tile_n)
    num_tiles = N_pad // tile_n

    # ---- operand prep (no dtype copy of x; pad only if N is ragged) ---------
    batch = batch.astype(jnp.int32)
    if N_pad != N:
        # TODO(synk): producers can avoid this copy entirely by supplying
        # tile-aligned node counts; the kernel itself never needs padded x.
        x_in = jnp.zeros((N_pad, E), x.dtype).at[:N].set(x)
        batch_p = jnp.full((N_pad,), -1, jnp.int32).at[:N].set(batch)
    else:
        x_in = x
        batch_p = batch
    batch_row = batch_p.reshape(1, N_pad)

    f32 = jnp.float32
    # fused layer-1: columns [0,H) gate hidden, [H,2H) value hidden, rest zero.
    w1cat = (jnp.zeros((E, H2p), f32)
             .at[:, :H].set(params["w1g"])
             .at[:, H:H2].set(params["w1"])).astype(matmul_dtype)
    b1cat = (jnp.zeros((1, H2p), f32)
             .at[:, :H].set(params["b1g"])
             .at[:, H:H2].set(params["b1"]))
    # value head layer-2: rows [H,2H) carry w2, everything else zero.
    w2v = (jnp.zeros((H2p, Dp), f32).at[H:H2, :D].set(params["w2"])).astype(matmul_dtype)
    b2v = jnp.zeros((1, Dp), f32).at[:, :D].set(params["b2"])
    # gate head: the (H,) weight vector replicated across Gp rows so the gate
    # logits come straight out of an A @ B^T matmul in graph-major form.
    # (the gate bias b2g is a per-node constant -> cancels in the softmax)
    w2g_rep = (jnp.zeros((Gp, H2p), f32)
               .at[:, :H].set(jnp.broadcast_to(params["w2g"][:, 0][None, :], (Gp, H)))
               ).astype(matmul_dtype)

    out_padded = pl.pallas_call(
        _attn_pool_kernel,
        out_shape=jax.ShapeDtypeStruct((Gp, Dp), jnp.float32),
        grid_spec=pltpu.PrefetchScalarGridSpec(
            num_scalar_prefetch=0,
            grid=(num_tiles,),
            in_specs=[
                pl.BlockSpec((tile_n, E), lambda i: (i, 0)),      # x tile
                pl.BlockSpec((1, tile_n), lambda i: (0, i)),      # batch ids, lane-major
                pl.BlockSpec((E, H2p), lambda i: (0, 0)),         # fused W1 (resident)
                pl.BlockSpec((1, H2p), lambda i: (0, 0)),         # fused b1
                pl.BlockSpec((H2p, Dp), lambda i: (0, 0)),        # value W2
                pl.BlockSpec((1, Dp), lambda i: (0, 0)),          # value b2
                pl.BlockSpec((Gp, H2p), lambda i: (0, 0)),        # gate W2 (replicated)
            ],
            out_specs=pl.BlockSpec((Gp, Dp), lambda i: (0, 0)),   # accumulator-resident
            scratch_shapes=[
                pltpu.VMEM((Gp, 1), jnp.float32),     # running per-graph max
                pltpu.VMEM((Gp, 1), jnp.float32),     # running softmax denominator
                pltpu.VMEM((Gp, Dp), jnp.float32),    # running unnormalized accumulator
            ],
        ),
        compiler_params=pltpu.CompilerParams(
            dimension_semantics=("arbitrary",),       # carried softmax state across tiles
            vmem_limit_bytes=32 * 1024 * 1024,
        ),
    )(x_in, batch_row, w1cat, b1cat, w2v, b2v, w2g_rep)

    return out_padded[:G, :D]


def _reference(x, batch, params, num_graphs, matmul_dtype=jnp.bfloat16):
    """Pure-JAX reference with the same bf16-operand / f32-accumulation MLPs."""
    f32 = jnp.float32
    xm = x.astype(matmul_dtype)
    w1g = params["w1g"].astype(matmul_dtype)
    w2g = params["w2g"].astype(matmul_dtype)
    w1 = params["w1"].astype(matmul_dtype)
    w2 = params["w2"].astype(matmul_dtype)

    hg = jax.nn.relu(jnp.dot(xm, w1g, preferred_element_type=f32) + params["b1g"])
    gate = jnp.dot(hg.astype(matmul_dtype), w2g, preferred_element_type=f32) + params["b2g"]
    h = jax.nn.relu(jnp.dot(xm, w1, preferred_element_type=f32) + params["b1"])
    xt = jnp.dot(h.astype(matmul_dtype), w2, preferred_element_type=f32) + params["b2"]

    onehot = batch[:, None] == jnp.arange(num_graphs)[None, :]
    masked = jnp.where(onehot, gate, _NEG_BIG)
    m = masked.max(axis=0, keepdims=True)
    e = jnp.where(onehot, jnp.exp(gate - m), 0.0)
    alpha = e / e.sum(axis=0, keepdims=True)
    return alpha.T @ xt


def _make_params(key, embed_dim, hidden_dim, output_embed_dim):
    keys = jax.random.split(key, 8)

    def init(k, shape, scale=0.1):
        return (scale * jax.random.normal(k, shape)).astype(jnp.float32)

    return {
        # gate_nn: Linear(E,H) -> ReLU -> (Dropout p=0) -> Linear(H,1) -> (AttnDropout p=0)
        "w1g": init(keys[0], (embed_dim, hidden_dim)),
        "b1g": init(keys[1], (1, hidden_dim)),
        "w2g": init(keys[2], (hidden_dim, 1)),
        "b2g": init(keys[3], (1, 1)),
        # nn: Linear(E,H) -> ReLU -> (Dropout p=0) -> Linear(H,D)
        "w1": init(keys[4], (embed_dim, hidden_dim)),
        "b1": init(keys[5], (1, hidden_dim)),
        "w2": init(keys[6], (hidden_dim, output_embed_dim)),
        "b2": init(keys[7], (1, output_embed_dim)),
    }


if __name__ == "__main__":
    embed_dim, hidden_dim, output_embed_dim = 32, 32, 16
    key = jax.random.PRNGKey(0)
    kp, kx1, kx2 = jax.random.split(key, 3)
    params = _make_params(kp, embed_dim, hidden_dim, output_embed_dim)

    # tolerances: bf16 MXU operands everywhere (incl. the scatter-add per the
    # perf review) give ~2^-8 relative error on the pooled values.
    rtol, atol = 1e-2, 2e-3

    # ---- test 1: tiny batch (single node tile, no padding) ------------------
    N1, G1 = 8, 2
    x1 = jax.random.normal(kx1, (N1, embed_dim), dtype=jnp.float32)
    batch1 = jnp.array([0, 0, 0, 0, 1, 1, 1, 1], dtype=jnp.int32)
    out1 = jax.block_until_ready(gnn_attn_drug_pooling(x1, batch1, params, G1))
    ref1 = _reference(x1, batch1, params, G1)
    np.testing.assert_allclose(np.asarray(out1), np.asarray(ref1), rtol=rtol, atol=atol)

    # ---- test 2: larger ragged batch, single big tile (default block_n) -----
    N2, G2 = 300, 3
    x2 = jax.random.normal(kx2, (N2, embed_dim), dtype=jnp.float32)
    batch2 = jnp.concatenate([
        jnp.full((100,), 0, jnp.int32),
        jnp.full((120,), 1, jnp.int32),
        jnp.full((80,), 2, jnp.int32),
    ])
    ref2 = _reference(x2, batch2, params, G2)
    out2a = jax.block_until_ready(gnn_attn_drug_pooling(x2, batch2, params, G2))
    np.testing.assert_allclose(np.asarray(out2a), np.asarray(ref2), rtol=rtol, atol=atol)

    # ---- test 3: same batch, multi-tile online segment softmax --------------
    out2b = jax.block_until_ready(
        gnn_attn_drug_pooling(x2, batch2, params, G2, block_n=128))
    np.testing.assert_allclose(np.asarray(out2b), np.asarray(ref2), rtol=rtol, atol=atol)

    print("KERNEL_OK")
</pallas_src>

<mosaic_0001>
module attributes {stable_mosaic.version = 11 : i64} {
  func.func @_attn_pool_kernel(%arg0: i32, %arg1: memref<8x32xf32, #tpu.memory_space<vmem>>, %arg2: memref<1x8xi32, #tpu.memory_space<vmem>>, %arg3: memref<32x128xbf16, #tpu.memory_space<vmem>>, %arg4: memref<1x128xf32, #tpu.memory_space<vmem>>, %arg5: memref<128x128xbf16, #tpu.memory_space<vmem>>, %arg6: memref<1x128xf32, #tpu.memory_space<vmem>>, %arg7: memref<8x128xbf16, #tpu.memory_space<vmem>>, %arg8: memref<8x128xf32, #tpu.memory_space<vmem>>, %arg9: memref<8x1xf32, #tpu.memory_space<vmem>>, %arg10: memref<8x1xf32, #tpu.memory_space<vmem>>, %arg11: memref<8x128xf32, #tpu.memory_space<vmem>>) attributes {dimension_semantics = [#tpu.dimension_semantics<arbitrary>], iteration_bounds = array<i64: 1>, scalar_prefetch = 0 : i64, scratch_operands = 3 : i64, tpu.core_type = #tpu.core_type<tc>, window_params = [{transform_indices = @transform_0, window_bounds = array<i64: 8, 32>}, {transform_indices = @transform_1, window_bounds = array<i64: 1, 8>}, {pipeline_mode = #tpu.pipeline_mode<synchronous>, transform_indices = @transform_2, window_bounds = array<i64: 32, 128>}, {pipeline_mode = #tpu.pipeline_mode<synchronous>, transform_indices = @transform_3, window_bounds = array<i64: 1, 128>}, {pipeline_mode = #tpu.pipeline_mode<synchronous>, transform_indices = @transform_4, window_bounds = array<i64: 128, 128>}, {pipeline_mode = #tpu.pipeline_mode<synchronous>, transform_indices = @transform_5, window_bounds = array<i64: 1, 128>}, {pipeline_mode = #tpu.pipeline_mode<synchronous>, transform_indices = @transform_6, window_bounds = array<i64: 8, 128>}, {pipeline_mode = #tpu.pipeline_mode<synchronous>, transform_indices = @transform_7, window_bounds = array<i64: 8, 128>}]} {
    %c0_i32 = arith.constant 0 : i32
    %0 = arith.cmpi eq, %arg0, %c0_i32 : i32
    %1 = arith.extui %0 : i1 to i32
    %c0_i32_0 = arith.constant 0 : i32
    %2 = arith.cmpi ne, %1, %c0_i32_0 : i32
    scf.if %2 {
      %cst_37 = arith.constant -1.000000e+30 : f32
      %57 = vector.broadcast %cst_37 : f32 to vector<8x1xf32>
      %c0_38 = arith.constant 0 : index
      %c0_39 = arith.constant 0 : index
      %58 = vector.load %arg9[%c0_38, %c0_39] : memref<8x1xf32, #tpu.memory_space<vmem>>, vector<8x1xf32>
      tpu.vector_store %arg9[%c0_38, %c0_39], %57 {strides = array<i32>} : memref<8x1xf32, #tpu.memory_space<vmem>>, vector<8x1xf32>,
      %cst_40 = arith.constant 0.000000e+00 : f32
      %59 = vector.broadcast %cst_40 : f32 to vector<8x1xf32>
      %c0_41 = arith.constant 0 : index
      %c0_42 = arith.constant 0 : index
      %60 = vector.load %arg10[%c0_41, %c0_42] : memref<8x1xf32, #tpu.memory_space<vmem>>, vector<8x1xf32>
      tpu.vector_store %arg10[%c0_41, %c0_42], %59 {strides = array<i32>} : memref<8x1xf32, #tpu.memory_space<vmem>>, vector<8x1xf32>,
      %cst_43 = arith.constant 0.000000e+00 : f32
      %61 = vector.broadcast %cst_43 : f32 to vector<8x128xf32>
      %c0_44 = arith.constant 0 : index
      %c0_45 = arith.constant 0 : index
      %62 = vector.load %arg11[%c0_44, %c0_45] : memref<8x128xf32, #tpu.memory_space<vmem>>, vector<8x128xf32>
      tpu.vector_store %arg11[%c0_44, %c0_45], %61 {strides = array<i32>} : memref<8x128xf32, #tpu.memory_space<vmem>>, vector<8x128xf32>,
    } else {
    }
    %c0 = arith.constant 0 : index
    %c0_1 = arith.constant 0 : index
    %3 = vector.load %arg1[%c0, %c0_1] : memref<8x32xf32, #tpu.memory_space<vmem>>, vector<8x32xf32>
    %4 = arith.truncf %3 : vector<8x32xf32> to vector<8x32xbf16>
    %c0_2 = arith.constant 0 : index
    %c0_3 = arith.constant 0 : index
    %5 = vector.load %arg3[%c0_2, %c0_3] : memref<32x128xbf16, #tpu.memory_space<vmem>>, vector<32x128xbf16>
    %cst = arith.constant dense<0.000000e+00> : vector<8x128xf32>
    %6 = tpu.matmul %4, %5, %cst {dimension_numbers = #tpu.dot_dimension_numbers<[1], [0], [0], [1], [0, 0, 1, 1], [], []>} : vector<8x32xbf16>, vector<32x128xbf16>, vector<8x128xf32> -> vector<8x128xf32>
    %c0_4 = arith.constant 0 : index
    %c0_5 = arith.constant 0 : index
    %7 = vector.load %arg4[%c0_4, %c0_5] : memref<1x128xf32, #tpu.memory_space<vmem>>, vector<1x128xf32>
    %8 = vector.broadcast %7 : vector<1x128xf32> to vector<8x128xf32>
    %9 = arith.addf %6, %8 : vector<8x128xf32>
    %cst_6 = arith.constant 0.000000e+00 : f32
    %10 = vector.broadcast %cst_6 : f32 to vector<8x128xf32>
    %11 = arith.maximumf %9, %10 : vector<8x128xf32>
    %12 = arith.truncf %11 : vector<8x128xf32> to vector<8x128xbf16>
    %c0_7 = arith.constant 0 : index
    %c0_8 = arith.constant 0 : index
    %13 = vector.load %arg5[%c0_7, %c0_8] : memref<128x128xbf16, #tpu.memory_space<vmem>>, vector<128x128xbf16>
    %cst_9 = arith.constant dense<0.000000e+00> : vector<8x128xf32>
    %14 = tpu.matmul %12, %13, %cst_9 {dimension_numbers = #tpu.dot_dimension_numbers<[1], [0], [0], [1], [0, 0, 1, 1], [], []>} : vector<8x128xbf16>, vector<128x128xbf16>, vector<8x128xf32> -> vector<8x128xf32>
    %c0_10 = arith.constant 0 : index
    %c0_11 = arith.constant 0 : index
    %15 = vector.load %arg6[%c0_10, %c0_11] : memref<1x128xf32, #tpu.memory_space<vmem>>, vector<1x128xf32>
    %16 = vector.broadcast %15 : vector<1x128xf32> to vector<8x128xf32>
    %17 = arith.addf %14, %16 : vector<8x128xf32>
    %c0_12 = arith.constant 0 : index
    %c0_13 = arith.constant 0 : index
    %18 = vector.load %arg7[%c0_12, %c0_13] : memref<8x128xbf16, #tpu.memory_space<vmem>>, vector<8x128xbf16>
    %cst_14 = arith.constant dense<0.000000e+00> : vector<8x8xf32>
    %19 = tpu.matmul %18, %12, %cst_14 {dimension_numbers = #tpu.dot_dimension_numbers<[1], [1], [0], [0], [0, 0, 1, 0], [], []>} : vector<8x128xbf16>, vector<8x128xbf16>, vector<8x8xf32> -> vector<8x8xf32>
    %c0_15 = arith.constant 0 : index
    %c0_16 = arith.constant 0 : index
    %20 = vector.load %arg2[%c0_15, %c0_16] : memref<1x8xi32, #tpu.memory_space<vmem>>, vector<1x8xi32>
    %21 = tpu.iota {dimensions = array<i32: 0>} : vector<8x8xi32>
    %22 = vector.broadcast %20 : vector<1x8xi32> to vector<8x8xi32>
    %23 = arith.cmpi eq, %22, %21 : vector<8x8xi32>
    %cst_17 = arith.constant -1.000000e+30 : f32
    %24 = vector.broadcast %cst_17 : f32 to vector<8x8xf32>
    %25 = arith.select %23, %19, %24 : vector<8x8xi1>, vector<8x8xf32>
    %cst_18 = arith.constant dense<0xFF800000> : vector<8xf32>
    %26 = vector.multi_reduction <maximumf>, %25, %cst_18 [1] : vector<8x8xf32> to vector<8xf32>
    %27 = vector.shape_cast %26 : vector<8xf32> to vector<8x1xf32>
    %c0_19 = arith.constant 0 : index
    %c0_20 = arith.constant 0 : index
    %28 = vector.load %arg9[%c0_19, %c0_20] : memref<8x1xf32, #tpu.memory_space<vmem>>, vector<8x1xf32>
    %29 = arith.maximumf %28, %27 : vector<8x1xf32>
    %c0_21 = arith.constant 0 : index
    %c0_22 = arith.constant 0 : index
    %30 = vector.load %arg9[%c0_21, %c0_22] : memref<8x1xf32, #tpu.memory_space<vmem>>, vector<8x1xf32>
    tpu.vector_store %arg9[%c0_21, %c0_22], %29 {strides = array<i32>} : memref<8x1xf32, #tpu.memory_space<vmem>>, vector<8x1xf32>,
    %31 = arith.subf %28, %29 : vector<8x1xf32>
    %32 = math.exp %31 : vector<8x1xf32>
    %33 = vector.broadcast %29 : vector<8x1xf32> to vector<8x8xf32>
    %34 = arith.subf %25, %33 : vector<8x8xf32>
    %cst_23 = arith.constant 0.000000e+00 : f32
    %35 = vector.broadcast %cst_23 : f32 to vector<8x8xf32>
    %36 = arith.minimumf %34, %35 : vector<8x8xf32>
    %37 = math.exp %36 : vector<8x8xf32>
    %cst_24 = arith.constant 0.000000e+00 : f32
    %38 = vector.broadcast %cst_24 : f32 to vector<8x8xf32>
    %39 = arith.select %23, %37, %38 : vector<8x8xi1>, vector<8x8xf32>
    %c0_25 = arith.constant 0 : index
    %c0_26 = arith.constant 0 : index
    %40 = vector.load %arg10[%c0_25, %c0_26] : memref<8x1xf32, #tpu.memory_space<vmem>>, vector<8x1xf32>
    %41 = arith.mulf %32, %40 : vector<8x1xf32>
    %cst_27 = arith.constant dense<0.000000e+00> : vector<8xf32>
    %42 = vector.multi_reduction <add>, %39, %cst_27 [1] : vector<8x8xf32> to vector<8xf32>
    %43 = vector.shape_cast %42 : vector<8xf32> to vector<8x1xf32>
    %44 = arith.addf %41, %43 : vector<8x1xf32>
    %c0_28 = arith.constant 0 : index
    %c0_29 = arith.constant 0 : index
    %45 = vector.load %arg10[%c0_28, %c0_29] : memref<8x1xf32, #tpu.memory_space<vmem>>, vector<8x1xf32>
    tpu.vector_store %arg10[%c0_28, %c0_29], %44 {strides = array<i32>} : memref<8x1xf32, #tpu.memory_space<vmem>>, vector<8x1xf32>,
    %46 = arith.truncf %39 : vector<8x8xf32> to vector<8x8xbf16>
    %47 = arith.truncf %17 : vector<8x128xf32> to vector<8x128xbf16>
    %cst_30 = arith.constant dense<0.000000e+00> : vector<8x128xf32>
    %48 = tpu.matmul %46, %47, %cst_30 {dimension_numbers = #tpu.dot_dimension_numbers<[1], [0], [0], [1], [0, 0, 1, 1], [], []>} : vector<8x8xbf16>, vector<8x128xbf16>, vector<8x128xf32> -> vector<8x128xf32>
    %c0_31 = arith.constant 0 : index
    %c0_32 = arith.constant 0 : index
    %49 = vector.load %arg11[%c0_31, %c0_32] : memref<8x128xf32, #tpu.memory_space<vmem>>, vector<8x128xf32>
    %50 = vector.broadcast %32 : vector<8x1xf32> to vector<8x128xf32>
    %51 = arith.mulf %50, %49 : vector<8x128xf32>
    %52 = arith.addf %51, %48 : vector<8x128xf32>
    %c0_33 = arith.constant 0 : index
    %c0_34 = arith.constant 0 : index
    %53 = vector.load %arg11[%c0_33, %c0_34] : memref<8x128xf32, #tpu.memory_space<vmem>>, vector<8x128xf32>
    tpu.vector_store %arg11[%c0_33, %c0_34], %52 {strides = array<i32>} : memref<8x128xf32, #tpu.memory_space<vmem>>, vector<8x128xf32>,
    %c0_i32_35 = arith.constant 0 : i32
    %54 = arith.cmpi eq, %arg0, %c0_i32_35 : i32
    %55 = arith.extui %54 : i1 to i32
    %c0_i32_36 = arith.constant 0 : i32
    %56 = arith.cmpi ne, %55, %c0_i32_36 : i32
    scf.if %56 {
      %c0_37 = arith.constant 0 : index
      %c0_38 = arith.constant 0 : index
      %57 = vector.load %arg10[%c0_37, %c0_38] : memref<8x1xf32, #tpu.memory_space<vmem>>, vector<8x1xf32>
      %cst_39 = arith.constant 1.000000e-30 : f32
      %58 = vector.broadcast %cst_39 : f32 to vector<8x1xf32>
      %59 = arith.maximumf %57, %58 : vector<8x1xf32>
      %c0_40 = arith.constant 0 : index
      %c0_41 = arith.constant 0 : index
      %60 = vector.load %arg11[%c0_40, %c0_41] : memref<8x128xf32, #tpu.memory_space<vmem>>, vector<8x128xf32>
      %61 = vector.broadcast %59 : vector<8x1xf32> to vector<8x128xf32>
      %62 = arith.divf %60, %61 : vector<8x128xf32>
      %c0_42 = arith.constant 0 : index
      %c0_43 = arith.constant 0 : index
      %63 = vector.load %arg8[%c0_42, %c0_43] : memref<8x128xf32, #tpu.memory_space<vmem>>, vector<8x128xf32>
      tpu.vector_store %arg8[%c0_42, %c0_43], %62 {strides = array<i32>} : memref<8x128xf32, #tpu.memory_space<vmem>>, vector<8x128xf32>,
    } else {
    }
    return
  }
  func.func @transform_0(%arg0: i32) -> (i32, i32) {
    %c0_i32 = arith.constant 0 : i32
    %c0_i32_0 = arith.constant 0 : i32
    return %arg0, %c0_i32 : i32, i32
  }
  func.func @transform_1(%arg0: i32) -> (i32, i32) {
    %c0_i32 = arith.constant 0 : i32
    %c0_i32_0 = arith.constant 0 : i32
    return %c0_i32, %arg0 : i32, i32
  }
  func.func @transform_2(%arg0: i32) -> (i32, i32) {
    %c0_i32 = arith.constant 0 : i32
    %c0_i32_0 = arith.constant 0 : i32
    %c0_i32_1 = arith.constant 0 : i32
    return %c0_i32, %c0_i32_0 : i32, i32
  }
  func.func @transform_3(%arg0: i32) -> (i32, i32) {
    %c0_i32 = arith.constant 0 : i32
    %c0_i32_0 = arith.constant 0 : i32
    %c0_i32_1 = arith.constant 0 : i32
    return %c0_i32, %c0_i32_0 : i32, i32
  }
  func.func @transform_4(%arg0: i32) -> (i32, i32) {
    %c0_i32 = arith.constant 0 : i32
    %c0_i32_0 = arith.constant 0 : i32
    %c0_i32_1 = arith.constant 0 : i32
    return %c0_i32, %c0_i32_0 : i32, i32
  }
  func.func @transform_5(%arg0: i32) -> (i32, i32) {
    %c0_i32 = arith.constant 0 : i32
    %c0_i32_0 = arith.constant 0 : i32
    %c0_i32_1 = arith.constant 0 : i32
    return %c0_i32, %c0_i32_0 : i32, i32
  }
  func.func @transform_6(%arg0: i32) -> (i32, i32) {
    %c0_i32 = arith.constant 0 : i32
    %c0_i32_0 = arith.constant 0 : i32
    %c0_i32_1 = arith.constant 0 : i32
    return %c0_i32, %c0_i32_0 : i32, i32
  }
  func.func @transform_7(%arg0: i32) -> (i32, i32) {
    %c0_i32 = arith.constant 0 : i32
    %c0_i32_0 = arith.constant 0 : i32
    %c0_i32_1 = arith.constant 0 : i32
    return %c0_i32, %c0_i32_0 : i32, i32
  }
}

</mosaic_0001>

<bundles_post_ra>
// kernel: tpu_custom_call.1
= control target key start
LH: loop header
LB: loop body
LE: loop exit
PB: predicated region body
PF: predicated region fallthrough
CT: control target
= control target key end

     0   :  { %12 = vsyncpa [#allocation6], 0  ;;  %s666_s0 = inlined_call_operand.hbm [shape: f32[8,32], index: 0, kind: input, shape index: {}]   ;;  %s667_s1 = inlined_call_operand.hbm [shape: s32[1,8], index: 1, kind: input, shape index: {}]   ;;  %s668_s2 = inlined_call_operand.hbm [shape: bf16[32,128], index: 2, kind: input, shape index: {}]   ;;  %s669_s3 = inlined_call_operand.vmem [shape: f32[1,128], index: 3, kind: input, shape index: {}]   ;;  %s670_s4 = inlined_call_operand.hbm [shape: bf16[128,128], index: 4, kind: input, shape index: {}]   ;;  %s671_s5 = inlined_call_operand.hbm [shape: f32[1,128], index: 5, kind: input, shape index: {}]   ;;  %s672_s6 = inlined_call_operand.vmem [shape: bf16[8,128], index: 6, kind: input, shape index: {}]   ;;  %s673_s7 = inlined_call_operand.hbm [shape: f32[8,128], index: 7, kind: output, shape index: {}]  }
   0x1   :  { %13 = vsyncpa [#allocation9], 0 }
   0x2   :  { %14 = vsyncpa [#allocation12], 0  ;;  %s32_s26 = sshll.u32 %s667_s1, 4  ;;  %s33_s26 = int_to_ptr.hbm [resolvable:$true] %s32_s26 }
   0x3   :  { %15 = vsyncpa [#allocation7], 0  ;;  %s582_s27 = smov [#allocation8]   ;;  %s57_s8 = sshll.u32 %s670_s4, 4  ;;  %s58_s8 = int_to_ptr.hbm [resolvable:$true] %s57_s8 }
   0x4   :  { %s34_s28 = sshll.u32 %s582_s27, 4  ;;  %s583_s9 = smov [#allocation11]   ;;  %s35_s28 = int_to_ptr.vmem [resolvable:$true] %s34_s28 }
   0x5   :  { %37 = dma.hbm_to_vmem [thread:$0]  %s33_s26, 16, %s35_s28, [#allocation9]  }
   0x6   :  { %s59_s10 = sshll.u32 %s583_s9, 4  ;;  %s21_s13 = sshll.u32 %s666_s0, 4  ;;  %s60_s10 = int_to_ptr.vmem [resolvable:$true] %s59_s10  ;;  %s22_s13 = int_to_ptr.hbm [resolvable:$true] %s21_s13 }
   0x7   :  { %s584_s1 = smov 64   ;;  %s585_s14 = smov 4  }
   0x8   :  { %65 = dma.hbm_to_vmem [thread:$0]  %s58_s8, 1024, %s60_s10, [#allocation12], %s584_s1, %s584_s1, %s585_s14  }
   0x9   :  { %s42_s17 = sshll.u32 %s668_s2, 4  ;;  %s586_s18 = smov [#allocation5]   ;;  %s43_s17 = int_to_ptr.hbm [resolvable:$true] %s42_s17 }
   0xa   :  { %s23_s19 = sshll.u32 %s586_s18, 4  ;;  %s587_s4 = smov [#allocation10]   ;;  %s24_s19 = int_to_ptr.vmem [resolvable:$true] %s23_s19 }
   0xb   :  { %26 = dma.hbm_to_vmem [thread:$0]  %s22_s13, 128, %s24_s19, [#allocation6]  }
   0xc   :  { %s44_s20 = sshll.u32 %s587_s4, 4  ;;  %s71_s0 = sshll.u32 %s671_s5, 4  ;;  %s45_s20 = int_to_ptr.vmem [resolvable:$true] %s44_s20  ;;  %s72_s0 = int_to_ptr.hbm [resolvable:$true] %s71_s0 }
   0xd   :  { %50 = dma.hbm_to_vmem [thread:$0]  %s43_s17, 256, %s45_s20, [#allocation9], %s584_s1, %s584_s1, %s585_s14  }
   0xe   :  { %s588_s23 = smov [#allocation13]  }
   0xf   :  { %s73_s24 = sshll.u32 %s588_s23, 4  ;;  %s74_s24 = int_to_ptr.vmem [resolvable:$true] %s73_s24 }
  0x10   :  { %76 = dma.hbm_to_vmem [thread:$0]  %s72_s0, 16, %s74_s24, [#allocation12]  }
  0x11   :  { %574 = dma.done.wait [#allocation6], 128  }
  0x12   :  { %575 = vsyncadd [#allocation6], 4294967168 }
  0x13   :  { %576 = dma.done.wait [#allocation9], 272  }
  0x14   :  { %577 = vsyncadd [#allocation9], 4294967024 }
  0x15   :  { %578 = dma.done.wait [#allocation12], 1040  }
  0x16   :  { %579 = vsyncadd [#allocation12], 4294966256  ;;  %v398_v0 = vld [vmem:[#allocation10 + $0x8] sm:$0xff]  ;;  %v397_v2 = vld [vmem:[#allocation10] sm:$0xff]  ;;  %vm130_vm0 = vcmask 261120   ;;  %vm104_vm1 = vcmask 7168   ;;  %v245_v24 = vlaneseq }
  0x17   :  { %v406_v1 = vld [vmem:[#allocation11 + $0x38] sm:$0xff]  ;;  %140 = vmatpush.bf16.msra.mxu0 %v398_v0  ;;  %v108_v3 = vld [vmem:[#allocation5] sm:$0xff]  ;;  %v405_v4 = vld [vmem:[#allocation11 + $0x30] sm:$0xff]  ;;  %v589_v19 = vmov -1e+30   ;;  %vm283_vm2 = vcmask 1043456  }
  0x18   :  { %217 = vmatpush.bf16.msra.mxu1 %v406_v1  ;;  %v109_v5 = vpack.c.bf16 %v108_v3, %v108_v3  ;;  %v404_v6 = vld [vmem:[#allocation11 + $0x28] sm:$0xff]  ;;  %v403_v7 = vld [vmem:[#allocation11 + $0x20] sm:$0xff]  ;;  %v402_v8 = vld [vmem:[#allocation11 + $0x18] sm:$0xff]  ;;  %105 = vst.msk [vmem:[#allocation2] sm:$0xff] %vm104_vm1, %v589_v19  ;;  %v246_v26 = vshrl.u32 %v245_v24, 7  ;;  %vm250_vm4 = vcmask 64512  }
  0x19   :  { %v401_v9 = vld [vmem:[#allocation11 + $0x10] sm:$0xff]  ;;  %v400_v10 = vld [vmem:[#allocation11 + $0x8] sm:$0xff]  ;;  %v399_v11 = vld [vmem:[#allocation11] sm:$0xff]  ;;  %v590_v33 = vmov 0   ;;  %v591_v34 = vmov 0.0   ;;  %s343_s29 = sshll.u32 %s673_s7, 4  ;;  %s344_s29 = int_to_ptr.hbm [resolvable:$true] %s343_s29 }
  0x1a   :  { %v421_v12 = vld [vmem:[%s669_s3] ss:$0 sm:$0xff]  ;;  %v422_v20 = vld [vmem:[#allocation13] ss:$0 sm:$0xff]  ;;  %v423_v27 = vld [vmem:[#allocation8] ss:$0 sm:$0xff]  ;;  %418 = vset.pattern.permute.xlu0 %v590_v33  ;;  %420 = vset.pattern.permute.xlu2 %v590_v33 }
  0x1b   :  { %141 = vmatpush.bf16.msra.mxu0 %v397_v2  ;;  %v230_v18 = vld [vmem:[%s672_s6] sm:$0xf]  ;;  %vm248_vm3 = vcmp.eq.s32.totalorder %v423_v27, %v246_v26  ;;  %419 = vset.pattern.permute.xlu1 %v590_v33  ;;  %106 = vst.msk [vmem:[#allocation3] sm:$0xff] %vm104_vm1, %v591_v34  ;;  %s592_s3 = smov [#allocation14]  }
  0x1c   :  { %218 = vmatpush.bf16.msra.mxu1 %v405_v4  ;;  %s341_s6 = sshll.u32 %s592_s3, 4  ;;  %s342_s6 = int_to_ptr.vmem [resolvable:$true] %s341_s6 }
  0x1e   :  { %363 = vmatmul.msk.bf16.vlgmr.msra.gmra.mxu0 %vm130_vm0, %v109_v5 }
  0x1f   :  { %v254_v35 = vld [vmem:[#allocation2] sm:$0xff] }
  0x20   :  { %219 = vmatpush.bf16.msra.mxu1 %v404_v6 }
  0x22   :  { %v271_v49 = vld [vmem:[#allocation3] sm:$0xff] }
  0x24   :  { %220 = vmatpush.bf16.msra.mxu1 %v403_v7 }
  0x28   :  { %221 = vmatpush.bf16.msra.mxu1 %v402_v8 }
  0x2c   :  { %222 = vmatpush.bf16.msra.mxu1 %v401_v9 }
  0x30   :  { %223 = vmatpush.bf16.msra.mxu1 %v400_v10 }
  0x34   :  { %224 = vmatpush.bf16.msra.mxu1 %v399_v11 }
  0x9b   :  { %v143_v13 = vpop.f32.mrf.mxu0 }
  0x9c   :  { %v144_v14 = vadd.f32 %v421_v12, %v143_v13 }
  0x9e   :  { %v147_v15 = vmax.f32 %v144_v14, 0.0 }
  0xa0   :  { %v148_v16 = vpack.c.bf16 %v147_v15, %v147_v15 }
  0xa2   :  { %225 = vmatmul.bf16.vlgmr.msra.gmra.mxu1 %v148_v16  ;;  %238 = vmatpush.bf16.xpose.msra.mxu2 %v148_v16 }
  0xa3   :  { %v145_v17 = vpop.f32.mrf.mxu0 }
  0xa9   :  { %239 = vmatmul.bf16.vlgmr.msra.gmra.mxu2 %v230_v18 }
 0x11f   :  { %v226_v21 = vpop.f32.mrf.mxu1 }
 0x120   :  { %v227_v22 = vadd.f32 %v422_v20, %v226_v21 }
 0x122   :  { %v279_v23 = vpack.c.bf16 %v227_v22, %v227_v22 }
 0x124   :  { %v285_v25 = vsel %vm283_vm2, %v279_v23, 0 }
 0x125   :  { %294 = vmatpush.bf16.msra.mxu3 %v285_v25 }
 0x127   :  { %v228_v28 = vpop.f32.mrf.mxu1 }
 0x12c   :  { %v240_v29 = vpop.f32.mrf.mxu2 }
 0x12d   :  { %v249_v30 = vsel %vm248_vm3, %v240_v29, -1e+30 }
 0x12e   :  { %v251_v31 = vsel %vm250_vm4, %v249_v30, -inf }
 0x12f   :  { %252 = vmax.xlane.f32.xlu0 %v251_v31 }
 0x134   :  { %v242_v32 = vpop.f32.mrf.mxu2 }
 0x1a2   :  { %v253_v36 = vpop.xlane.xlu0 %252 }
 0x1a3   :  { %v255_v37 = vmax.f32 %v254_v35, %v253_v36 }
 0x1a5   :  { %257 = vst.msk [vmem:[#allocation2] sm:$0xff] %vm104_vm1, %v255_v37  ;;  %v258_v38 = vsub.f32 %v254_v35, %v255_v37  ;;  %263 = vperm.xlu0 %418, %v255_v37  }
 0x1a7   :  { %v259_v39 = vmul.f32 1.442695, %v258_v38 }
 0x1a9   :  { %424 = vpow2.f32 %v259_v39 }
 0x1af   :  { %v425_v40 = vpop.eup %424 }
 0x1b0   :  { %303 = vperm.xlu2 %420, %v425_v40   ;;  %v272_v50 = vmul.f32 %v425_v40, %v271_v49 }
 0x20a   :  { %v304_v61 = vpop.permute.xlu2 %303 }
 0x20b   :  { %v306_v1 = vmul.f32 0.0, %v304_v61 }
 0x217   :  { %v264_v41 = vpop.permute.xlu0 %263 }
 0x218   :  { %v266_v42 = vsub.f32 %v249_v30, %v264_v41 }
 0x21a   :  { %v267_v43 = vmin.f32 %v266_v42, 0.0 }
 0x21c   :  { %v268_v44 = vmul.f32 1.442695, %v267_v43 }
 0x21e   :  { %426 = vpow2.f32 %v268_v44 }
 0x224   :  { %v427_v45 = vpop.eup %426 }
 0x225   :  { %v270_v46 = vsel %vm248_vm3, %v427_v45, 0.0 }
 0x226   :  { %v273_v47 = vsel %vm250_vm4, %v270_v46, 0.0  ;;  %v278_v48 = vpack.c.bf16 %v270_v46, %v270_v46 }
 0x227   :  { %274 = vadd.xlane.f32.xlu1 %v273_v47 }
 0x228   :  { %396 = vmatmul.msk.bf16.vlgmr.msra.gmra.mxu3 %vm250_vm4, %v278_v48 }
 0x29a   :  { %v275_v51 = vpop.xlane.xlu1 %274 }
 0x29b   :  { %v276_v52 = vadd.f32 %v275_v51, %v272_v50 }
 0x29d   :  { %277 = vst.msk [vmem:[#allocation3] sm:$0xff] %vm104_vm1, %v276_v52 }
 0x2a4   :  { %v312_v53 = vld [vmem:[#allocation3] sm:$0xff] }
 0x2a5   :  { %v313_v54 = vmax.f32 %v312_v53, 1e-30 }
 0x2a7   :  { %317 = vperm.xlu1 %419, %v313_v54  }
 0x2ab   :  { %v296_v55 = vpop.f32.mrf.mxu3 }
 0x2ac   :  { %v307_v4 = vadd.f32 %v306_v1, %v296_v55 }
 0x2b3   :  { %v298_v56 = vpop.f32.mrf.mxu3 }
 0x319   :  { %v318_v57 = vpop.permute.xlu1 %317 }
 0x31a   :  { %428 = vrcp.f32 %v318_v57  ;;  %v331_v62 = vand.u32 2147483648, %v318_v57  ;;  %v329_v0 = vand.u32 2147483647, %v318_v57  ;;  %vm325_vm6 = vweird.f32 %v318_v57 }
 0x31c   :  { %v332_v3 = vor.u32 1.1754944e-38, %v331_v62  ;;  %vm330_vm8 = vcmp.eq.f32.partialorder %v329_v0, 8.507059e+37 }
 0x320   :  { %v429_v58 = vpop.eup %428 }
 0x321   :  { %v321_v59 = vmul.f32 %v429_v58, %v318_v57  ;;  %vm326_vm5 = vweird.f32 %v429_v58 }
 0x322   :  { %vm327_vm7 = vmor %vm325_vm6, %vm326_vm5 }
 0x323   :  { %v322_v60 = vsub.f32 1.0, %v321_v59 }
 0x325   :  { %v323_v63 = vmul.f32 %v429_v58, %v322_v60 }
 0x327   :  { %v324_v2 = vadd.f32 %v429_v58, %v323_v63 }
 0x329   :  { %v328_v5 = vsel %vm327_vm7, %v429_v58, %v324_v2 }
 0x32a   :  { %v333_v6 = vsel %vm330_vm8, %v332_v3, %v328_v5 }
 0x32b   :  { %v334_v7 = vmul.f32 %v333_v6, %v307_v4 }
 0x32d   :  { %335 = vst [vmem:[#allocation14] sm:$0xff] %v334_v7 }
 0x32e   :  { %346 = dma.vmem_to_hbm [thread:$0]  %s342_s6, 128, %s344_s29, [#allocation7]  }
 0x32f   :  { %580 = dma.done.wait [#allocation7], 128  }
 0x330   :  { %581 = vsyncadd [#allocation7], 4294967168 }
 0x331   :  { %351 = vsyncpa [#allocation6], 1 }
 0x332   :  { %352 = vsyncpa [#allocation9], 1 }
 0x333   :  { %353 = vsyncpa [#allocation12], 1 }
 0x334   :  { %354 = vsyncpa [#allocation7], 1 }

</bundles_post_ra>
